<compile_context>
chip_gen: v5e
topology: v5e:2x2
jax: 0.10.0
libtpu: 0.0.40
codegen_flags: <defaults>
</compile_context>

<pallas_src>
import functools

import jax
import jax.numpy as jnp
from jax.experimental import pallas as pl
from jax.experimental.pallas import tpu as pltpu

VGG_CFG = ((64, 64), (128, 128), (256, 256, 256), (512, 512, 512), (512, 512, 512))
LPIPS_SHIFT = jnp.array([-0.030, -0.088, -0.188], jnp.float32)  # per-channel (RGB)
LPIPS_SCALE = jnp.array([0.458, 0.448, 0.450], jnp.float32)

_CONV_VMEM_LIMIT = 48 * 1024 * 1024  # fits v7x (64 MiB physical) with headroom


def _round_up(x, m):
    return (x + m - 1) // m * m


# ----------------------------------------------------------------------------
# Pallas kernels
# ----------------------------------------------------------------------------
def _matmul_bias_act_kernel(a_ref, b_ref, bias_ref, o_ref, *, act, slope):
    """One M-tile of A(M,K) @ B(K,N) + bias with fused activation (full K, full N)."""
    r = jnp.dot(a_ref[...], b_ref[...], preferred_element_type=jnp.float32)
    r = r + bias_ref[...]
    if act == "relu":
        r = jnp.maximum(r, 0.0)
    elif act == "lrelu":
        r = jnp.where(r > 0, r, slope * r)
    o_ref[...] = r.astype(o_ref.dtype)


def _conv3x3_kernel(xg_ref, w_ref, bias_ref, o_ref, win_ref, sem_ref,
                    *, act, slope, g, wr, tm, rows):
    """Direct 3x3 stride-1 pad-1 conv on a flattened padded NHWC activation.

    xg_ref : (Rp + 2*g, Cin) in HBM (pl.ANY) — zero guard rows top/bottom.
    For output flat row r, tap (di, dj) reads row r + di*wr + dj (wr = W + 2).
    A halo window of `rows = tm + 2*g` rows is DMA'd per tile (double buffered) and
    the 9 shifted matmuls accumulate into the f32 output block.
    """
    i = pl.program_id(0)
    nsteps = pl.num_programs(0)
    slot = i % 2

    def start_fetch(tile_idx, slot_idx):
        pltpu.make_async_copy(
            xg_ref.at[pl.ds(tile_idx * tm, rows)],
            win_ref.at[slot_idx],
            sem_ref.at[slot_idx],
        ).start()

    @pl.when(i == 0)
    def _():
        start_fetch(0, 0)

    # wait for the current tile's halo window
    pltpu.make_async_copy(
        xg_ref.at[pl.ds(0, rows)], win_ref.at[slot], sem_ref.at[slot]
    ).wait()

    @pl.when(i + 1 < nsteps)
    def _():
        start_fetch(i + 1, 1 - slot)

    for t in range(9):
        di, dj = t // 3 - 1, t % 3 - 1
        off = g + di * wr + dj  # static, >= 0 because g >= wr + 1
        a = win_ref[slot, pl.ds(off, tm), :].astype(jnp.bfloat16)
        contrib = jnp.dot(a, w_ref[t], preferred_element_type=jnp.float32)
        if t == 0:
            o_ref[...] = contrib
        else:
            o_ref[...] += contrib

    r = o_ref[...] + bias_ref[...]
    if act == "relu":
        r = jnp.maximum(r, 0.0)
    elif act == "lrelu":
        r = jnp.where(r > 0, r, slope * r)
    o_ref[...] = r


def _bn_stats_kernel(x_ref, o_ref):
    """Accumulate per-channel [sum; sum of squares] over row tiles (rows zero-padded)."""
    i = pl.program_id(0)

    @pl.when(i == 0)
    def _():
        o_ref[...] = jnp.zeros_like(o_ref)

    x = x_ref[...]
    s = jnp.sum(x, axis=0, keepdims=True)
    sq = jnp.sum(x * x, axis=0, keepdims=True)
    o_ref[...] += jnp.concatenate([s, sq], axis=0)


def _scale_shift_lrelu_kernel(x_ref, sc_ref, sh_ref, o_ref, *, slope):
    """y = x*scale + shift ; LeakyReLU(slope) — BN apply with folded affine."""
    y = x_ref[...] * sc_ref[...] + sh_ref[...]
    o_ref[...] = jnp.where(y > 0, y, slope * y)


def _lpips_tap_kernel(f_ref, w_ref, o_ref, *, n, hw, eps):
    """normalize_tensor + squared diff + 1x1 lin weighting + spatial mean (per sample).

    f_ref block: (2n, thw, C) — first n samples are input features, last n are recon.
    Output (n, 1) is resident across the HW grid and accumulated, scaled by 1/hw at end.
    """
    i = pl.program_id(0)

    @pl.when(i == 0)
    def _():
        o_ref[...] = jnp.zeros_like(o_ref)

    f = f_ref[...]
    f0 = f[:n]
    f1 = f[n:]
    inv0 = pl.reciprocal(jnp.sqrt(jnp.sum(f0 * f0, axis=-1, keepdims=True)) + eps,
                         approx=True)
    inv1 = pl.reciprocal(jnp.sqrt(jnp.sum(f1 * f1, axis=-1, keepdims=True)) + eps,
                         approx=True)
    d = (f0 * inv0 - f1 * inv1) ** 2
    lin = jnp.sum(d * w_ref[...], axis=-1)                # (n, thw)
    o_ref[...] += jnp.sum(lin, axis=-1, keepdims=True)    # (n, 1)

    @pl.when(i == pl.num_programs(0) - 1)
    def _():
        o_ref[...] = o_ref[...] * (1.0 / hw)


def _reduce_mean_kernel(*refs, fn, n_valid, tr):
    """Tiled masked sum of fn(*inputs) over a sublane-dense (rows, 128) layout."""
    in_refs = refs[:-1]
    o_ref = refs[-1]
    i = pl.program_id(0)

    @pl.when(i == 0)
    def _():
        o_ref[...] = jnp.zeros_like(o_ref)

    vals = [r[...] for r in in_refs]
    row = jax.lax.broadcasted_iota(jnp.int32, (tr, 128), 0)
    col = jax.lax.broadcasted_iota(jnp.int32, (tr, 128), 1)
    idx = (i * tr + row) * 128 + col
    v = jnp.where(idx < n_valid, fn(*vals), 0.0)
    o_ref[...] += jnp.sum(v)


# ----------------------------------------------------------------------------
# Elementwise loss expressions (fed to the tiled reduction kernel)
# ----------------------------------------------------------------------------
def _l1_fn(a, b):
    return jnp.abs(a - b)


def _identity_fn(v):
    return v


def _softplus(z):
    return jnp.maximum(z, 0.0) + jnp.log1p(jnp.exp(-jnp.abs(z)))


def _hinge_fn(lr, lf):
    return 0.5 * (jnp.maximum(1.0 - lr, 0.0) + jnp.maximum(1.0 + lf, 0.0))


def _vanilla_fn(lr, lf):
    return 0.5 * (_softplus(-lr) + _softplus(lf))


def _bce_fn(logit, target):
    return jnp.maximum(logit, 0.0) - logit * target + jnp.log1p(jnp.exp(-jnp.abs(logit)))


# ----------------------------------------------------------------------------
# Pallas wrappers
# ----------------------------------------------------------------------------
def matmul_bias_act(a, b, bias, act="none", slope=0.2):
    """A(M,K) @ B(K,N) + bias(N) with fused activation. bf16 operands, f32 epilogue."""
    m, k = a.shape
    n_orig = b.shape[1]
    a = a.astype(jnp.bfloat16)
    b = b.astype(jnp.bfloat16)
    bias2 = bias.reshape(1, n_orig).astype(jnp.float32)

    npad = _round_up(n_orig, 128)
    if npad != n_orig:
        b = jnp.pad(b, ((0, 0), (0, npad - n_orig)))
        bias2 = jnp.pad(bias2, ((0, 0), (0, npad - n_orig)))

    if m <= 256:
        tm = _round_up(m, 8)
        mp = tm
    else:
        tm = 256
        mp = _round_up(m, 256)
    if mp != m:
        a = jnp.pad(a, ((0, mp - m), (0, 0)))

    out = pl.pallas_call(
        functools.partial(_matmul_bias_act_kernel, act=act, slope=slope),
        out_shape=jax.ShapeDtypeStruct((mp, npad), jnp.float32),
        grid_spec=pltpu.PrefetchScalarGridSpec(
            num_scalar_prefetch=0,
            grid=(mp // tm,),
            in_specs=[pl.BlockSpec((tm, k), lambda i: (i, 0)),
                      pl.BlockSpec((k, npad), lambda i: (0, 0)),
                      pl.BlockSpec((1, npad), lambda i: (0, 0))],
            out_specs=pl.BlockSpec((tm, npad), lambda i: (i, 0))),
        compiler_params=pltpu.CompilerParams(
            dimension_semantics=("parallel",),
            vmem_limit_bytes=_CONV_VMEM_LIMIT),
    )(a, b, bias2)

    if mp != m:
        out = out[:m]
    if npad != n_orig:
        out = out[:, :n_orig]
    return out


def im2col(x, kh, kw, stride, pad):
    """Glue: NHWC patches -> (N*Ho*Wo, kh*kw*C) (row order matches HWIO weights)."""
    n, h, w, c = x.shape
    xp = jnp.pad(x, ((0, 0), (pad, pad), (pad, pad), (0, 0)))
    ho = (h + 2 * pad - kh) // stride + 1
    wo = (w + 2 * pad - kw) // stride + 1
    cols = []
    for i in range(kh):
        for j in range(kw):
            cols.append(xp[:, i:i + stride * ho:stride, j:j + stride * wo:stride, :])
    a = jnp.stack(cols, axis=3)                          # (N, Ho, Wo, kh*kw, C)
    return a.reshape(n * ho * wo, kh * kw * c), (n, ho, wo)


def conv2d_im2col(x, w, b, stride, pad, act="none", slope=0.2):
    """Conv2d via im2col (bf16) + Pallas matmul.  Used for the 3-channel first VGG conv
    and the (small) NLayerDiscriminator convs."""
    # TODO(synk): discriminator 4x4 stride-2 convs still use a materialized im2col
    # (stride breaks the flat-offset trick used for the VGG direct-conv kernel).
    kh, kw, cin, cout = w.shape
    a, (n, ho, wo) = im2col(x.astype(jnp.bfloat16), kh, kw, stride, pad)
    y = matmul_bias_act(a, w.reshape(kh * kw * cin, cout), b, act=act, slope=slope)
    return y.reshape(n, ho, wo, cout)


def conv3x3_direct(x, w, b, act="relu", slope=0.2):
    """3x3 stride-1 pad-1 conv (NHWC, HWIO weights) without im2col materialization."""
    n, hgt, wid, cin = x.shape
    cout = w.shape[-1]
    wr = wid + 2
    xp = jnp.pad(x.astype(jnp.float32), ((0, 0), (1, 1), (1, 1), (0, 0)))
    r = n * (hgt + 2) * wr
    g = _round_up(wid + 3, 8)                 # guard rows, >= max |tap offset| = wr + 1

    if r <= 256:
        tm = _round_up(r, 8)
        rp = tm
    else:
        tm = 256
        rp = _round_up(r, 256)
    rows = tm + 2 * g

    flat = xp.reshape(r, cin)
    xg = jnp.pad(flat, ((g, rp - r + g), (0, 0)))        # (rp + 2g, cin)
    w9 = w.reshape(9, cin, cout).astype(jnp.bfloat16)
    bias2 = b.reshape(1, cout).astype(jnp.float32)

    out = pl.pallas_call(
        functools.partial(_conv3x3_kernel, act=act, slope=slope,
                          g=g, wr=wr, tm=tm, rows=rows),
        out_shape=jax.ShapeDtypeStruct((rp, cout), jnp.float32),
        grid_spec=pltpu.PrefetchScalarGridSpec(
            num_scalar_prefetch=0,
            grid=(rp // tm,),
            in_specs=[pl.BlockSpec(memory_space=pl.ANY),
                      pl.BlockSpec((9, cin, cout), lambda i: (0, 0, 0)),
                      pl.BlockSpec((1, cout), lambda i: (0, 0))],
            out_specs=pl.BlockSpec((tm, cout), lambda i: (i, 0)),
            scratch_shapes=[pltpu.VMEM((2, rows, cin), jnp.float32),
                            pltpu.SemaphoreType.DMA((2,))]),
        compiler_params=pltpu.CompilerParams(
            dimension_semantics=("arbitrary",),   # manual double-buffer carries state
            vmem_limit_bytes=_CONV_VMEM_LIMIT),
    )(xg, w9, bias2)

    out = out[:r].reshape(n, hgt + 2, wr, cout)[:, 1:hgt + 1, 1:wid + 1, :]
    return out


def batchnorm_lrelu(x, gamma, beta, eps=1e-5, slope=0.2):
    """Training-mode BatchNorm (batch stats) + LeakyReLU(slope), tiled over rows."""
    n, h, w, c = x.shape
    m = n * h * w
    xf = x.reshape(m, c).astype(jnp.float32)

    if m <= 512:
        tr = _round_up(m, 8)
        mp = tr
    else:
        tr = 512
        mp = _round_up(m, 512)
    if mp != m:
        xf = jnp.pad(xf, ((0, mp - m), (0, 0)))

    stats = pl.pallas_call(
        _bn_stats_kernel,
        out_shape=jax.ShapeDtypeStruct((2, c), jnp.float32),
        grid_spec=pltpu.PrefetchScalarGridSpec(
            num_scalar_prefetch=0,
            grid=(mp // tr,),
            in_specs=[pl.BlockSpec((tr, c), lambda i: (i, 0))],
            out_specs=pl.BlockSpec((2, c), lambda i: (0, 0))),
        compiler_params=pltpu.CompilerParams(dimension_semantics=("arbitrary",)),
    )(xf)

    mean = stats[0] / m
    var = stats[1] / m - mean * mean
    scale = gamma * jax.lax.rsqrt(var + eps)
    shift = beta - mean * scale

    y = pl.pallas_call(
        functools.partial(_scale_shift_lrelu_kernel, slope=slope),
        out_shape=jax.ShapeDtypeStruct((mp, c), jnp.float32),
        grid_spec=pltpu.PrefetchScalarGridSpec(
            num_scalar_prefetch=0,
            grid=(mp // tr,),
            in_specs=[pl.BlockSpec((tr, c), lambda i: (i, 0)),
                      pl.BlockSpec((1, c), lambda i: (0, 0)),
                      pl.BlockSpec((1, c), lambda i: (0, 0))],
            out_specs=pl.BlockSpec((tr, c), lambda i: (i, 0))),
        compiler_params=pltpu.CompilerParams(dimension_semantics=("parallel",)),
    )(xf, scale.reshape(1, c), shift.reshape(1, c))
    return y[:m].reshape(n, h, w, c)


def maxpool2x2(x):
    # glue: 2x2 max pool via reshape/max (not the hot path)
    n, h, w, c = x.shape
    return x.reshape(n, h // 2, 2, w // 2, 2, c).max(axis=(2, 4))


def tiled_mean(fn, *arrays):
    """mean over all elements of fn(*arrays) — tiled, sublane-dense (rows, 128) layout."""
    total_elems = int(arrays[0].size)
    cols = 128
    rows = pl.cdiv(total_elems, cols)
    if rows <= 512:
        tr = _round_up(rows, 8)
        rows_p = tr
    else:
        tr = 512
        rows_p = _round_up(rows, 512)
    padded = rows_p * cols
    mats = [jnp.pad(a.reshape(-1).astype(jnp.float32), (0, padded - total_elems))
            .reshape(rows_p, cols) for a in arrays]

    out = pl.pallas_call(
        functools.partial(_reduce_mean_kernel, fn=fn, n_valid=total_elems, tr=tr),
        out_shape=jax.ShapeDtypeStruct((1, 1), jnp.float32),
        grid_spec=pltpu.PrefetchScalarGridSpec(
            num_scalar_prefetch=0,
            grid=(rows_p // tr,),
            in_specs=[pl.BlockSpec((tr, cols), lambda i: (i, 0)) for _ in mats],
            out_specs=pl.BlockSpec((1, 1), lambda i: (0, 0))),
        compiler_params=pltpu.CompilerParams(dimension_semantics=("arbitrary",)),
    )(*mats)
    return out[0, 0] / total_elems


def lpips_tap_distance(feat, lin_w, n, eps=1e-10):
    """Per-tap LPIPS distance.  feat: (2n, H, W, C) — rows [:n]=x features, [n:]=y."""
    b2, h, w, c = feat.shape
    hw = h * w
    f = feat.reshape(b2, hw, c).astype(jnp.float32)
    if hw >= 256:
        thw = 256
        hwp = _round_up(hw, 256)
    else:
        thw = _round_up(hw, 8)
        hwp = thw
    if hwp != hw:
        f = jnp.pad(f, ((0, 0), (0, hwp - hw), (0, 0)))

    out = pl.pallas_call(
        functools.partial(_lpips_tap_kernel, n=n, hw=hw, eps=eps),
        out_shape=jax.ShapeDtypeStruct((n, 1), jnp.float32),
        grid_spec=pltpu.PrefetchScalarGridSpec(
            num_scalar_prefetch=0,
            grid=(hwp // thw,),
            in_specs=[pl.BlockSpec((b2, thw, c), lambda i: (0, i, 0)),
                      pl.BlockSpec((1, 1, c), lambda i: (0, 0, 0))],
            out_specs=pl.BlockSpec((n, 1), lambda i: (0, 0))),
        compiler_params=pltpu.CompilerParams(dimension_semantics=("arbitrary",)),
    )(f, lin_w.reshape(1, 1, c))
    return out


# ----------------------------------------------------------------------------
# Parameter init (deterministic, synthetic — no checkpoint)
# ----------------------------------------------------------------------------
def init_vgg_params(key):
    params = []
    cin = 3
    for stage in VGG_CFG:
        for cout in stage:
            key, k = jax.random.split(key)
            std = (2.0 / (3 * 3 * cin)) ** 0.5
            w = (std * jax.random.normal(k, (3, 3, cin, cout), jnp.float32))
            params.append((w.astype(jnp.bfloat16), jnp.zeros((cout,), jnp.float32)))
            cin = cout
    return params


def init_lpips_lin(key):
    # TODO(synk): synthetic non-negative lin weights, not the trained LPIPS weights.
    ws = []
    for c in (64, 128, 256, 512, 512):
        key, k = jax.random.split(key)
        ws.append(jnp.abs(0.05 * jax.random.normal(k, (c,), jnp.float32)))
    return ws


def init_discriminator_params(key, input_nc=3, ndf=64, n_layers=3):
    """NLayerDiscriminator (PatchGAN), weights_init: conv ~ N(0,0.02), BN gamma ~ N(1,0.02)."""
    def conv_w(k, cin, cout):
        return (0.02 * jax.random.normal(k, (4, 4, cin, cout), jnp.float32)).astype(jnp.bfloat16)

    def bn_p(k, c):
        return (1.0 + 0.02 * jax.random.normal(k, (c,), jnp.float32),
                jnp.zeros((c,), jnp.float32))

    keys = jax.random.split(key, 2 * (n_layers + 2))
    layers, ki = [], 0
    layers.append(dict(w=conv_w(keys[ki], input_nc, ndf), b=jnp.zeros((ndf,), jnp.float32),
                       stride=2, bn=None))
    ki += 2
    cin = ndf
    for n in range(1, n_layers):
        cout = ndf * min(2 ** n, 8)
        layers.append(dict(w=conv_w(keys[ki], cin, cout), b=jnp.zeros((cout,), jnp.float32),
                           stride=2, bn=bn_p(keys[ki + 1], cout)))
        ki += 2
        cin = cout
    cout = ndf * min(2 ** n_layers, 8)
    layers.append(dict(w=conv_w(keys[ki], cin, cout), b=jnp.zeros((cout,), jnp.float32),
                       stride=1, bn=bn_p(keys[ki + 1], cout)))
    ki += 2
    cin = cout
    layers.append(dict(w=conv_w(keys[ki], cin, 1), b=jnp.zeros((1,), jnp.float32),
                       stride=1, bn=None))
    return layers


# ----------------------------------------------------------------------------
# Model pieces
# ----------------------------------------------------------------------------
def vgg16_features(x, params):
    """Taps after relu1_2, relu2_2, relu3_3, relu4_3, relu5_3 (LPIPS VGG16 slices)."""
    taps, h, idx = [], x, 0
    for si, stage in enumerate(VGG_CFG):
        if si > 0:
            h = maxpool2x2(h)
        for _ in stage:
            w, b = params[idx]
            idx += 1
            if w.shape[2] < 8:   # first conv (cin=3): im2col path with its natural K=27
                h = conv2d_im2col(h, w, b, stride=1, pad=1, act="relu")
            else:                # direct 3x3 conv, no im2col materialization
                h = conv3x3_direct(h, w, b, act="relu")
        taps.append(h)
    return taps


def discriminator_forward(x, layers):
    h = x
    for li, layer in enumerate(layers):
        is_last = li == len(layers) - 1
        act = "lrelu" if (layer["bn"] is None and not is_last) else "none"
        h = conv2d_im2col(h, layer["w"], layer["b"], layer["stride"], 1, act=act)
        if layer["bn"] is not None:
            gamma, beta = layer["bn"]
            h = batchnorm_lrelu(h, gamma, beta)
    return h  # (N, Ho, Wo, 1) patch logits


def adopt_weight(weight, global_step, threshold=0, value=0.0):
    # traced-safe version of the reference's python `if`
    return jnp.where(jnp.asarray(global_step) < threshold, value, weight).astype(jnp.float32)


class LPIPSWithDiscriminatorPallas:
    def __init__(self, disc_start, pixelloss_weight=1.0, disc_num_layers=3,
                 disc_in_channels=3, disc_factor=1.0, disc_weight=1.0,
                 perceptual_weight=1.0, use_actnorm=False, disc_ndf=64,
                 disc_loss="hinge", seed=0):
        assert disc_loss in ("hinge", "vanilla")
        # TODO(synk): use_actnorm=True (ActNorm) not implemented; BatchNorm path only.
        self.recon_loss = "BCE" if disc_in_channels == 1 else "l1"
        self.pixel_weight = pixelloss_weight
        self.perceptual_weight = perceptual_weight
        self.disc_factor = disc_factor
        self.discriminator_weight = disc_weight
        self.discriminator_iter_start = disc_start
        self._d_fn = _hinge_fn if disc_loss == "hinge" else _vanilla_fn

        key = jax.random.PRNGKey(seed)
        kv, kl, kd = jax.random.split(key, 3)
        self.vgg_params = init_vgg_params(kv)
        self.lin_ws = init_lpips_lin(kl)
        self.disc_layers = init_discriminator_params(kd, disc_in_channels, disc_ndf,
                                                     disc_num_layers)

    def lpips(self, x, y):
        """LPIPS perceptual distance, returns (N, 1) (== torch (N,1,1,1))."""
        n = x.shape[0]
        both = jnp.concatenate([x, y], axis=0)           # single VGG pass over x & y
        scaled = (both - LPIPS_SHIFT) / LPIPS_SCALE
        taps = vgg16_features(scaled, self.vgg_params)
        val = jnp.zeros((n, 1), jnp.float32)
        for tap, w in zip(taps, self.lin_ws):
            val = val + lpips_tap_distance(tap, w, n)
        return val

    def forward(self, inputs, reconstructions, optimizer_idx, global_step,
                last_layer=None, split="train"):
        # public API: NCHW (PyTorch); internal: NHWC.
        x = jnp.transpose(inputs, (0, 2, 3, 1)).astype(jnp.float32)
        y = jnp.transpose(reconstructions, (0, 2, 3, 1)).astype(jnp.float32)
        n = x.shape[0]

        if self.recon_loss == "l1":
            if self.perceptual_weight > 0:
                p = self.lpips(x, y)                                 # (N, 1)
                p_loss_mean = jnp.mean(p)
            else:
                p_loss_mean = jnp.float32(0.0)
            # mean(|x-y| + pw * broadcast(p)) == mean|x-y| + pw * mean(p)
            nll_loss = tiled_mean(_l1_fn, x, y) + self.perceptual_weight * p_loss_mean
        else:  # BCE (disc_in_channels == 1) — perceptual_weight forced to 0
            p_loss_mean = jnp.float32(0.0)
            nll_loss = tiled_mean(_bce_fn, y, x)   # logits=reconstructions, targets=inputs
        rec_loss_mean = nll_loss  # mean(rec_loss) == nll_loss

        disc_factor = adopt_weight(self.disc_factor, global_step,
                                   threshold=self.discriminator_iter_start)

        if optimizer_idx == 0:
            logits_fake = discriminator_forward(y, self.disc_layers)
            g_loss = -tiled_mean(_identity_fn, logits_fake)
            # TODO(synk): calculate_adaptive_weight needs autograd through the external
            # generator's last layer (not available here); use the module's RuntimeError
            # fallback path: d_weight = 0.0.
            d_weight = jnp.float32(0.0)
            loss = nll_loss + d_weight * disc_factor * g_loss
            log = {f"{split}/total_loss": loss,
                   f"{split}/nll_loss": nll_loss,
                   f"{split}/rec_loss": rec_loss_mean,
                   f"{split}/p_loss": p_loss_mean,
                   f"{split}/d_weight": d_weight,
                   f"{split}/disc_factor": disc_factor,
                   f"{split}/g_loss": g_loss}
            return loss, log

        if optimizer_idx == 1:
            both = jnp.concatenate([x, y], axis=0)       # single discriminator pass
            logits = discriminator_forward(both, self.disc_layers)
            logits_real, logits_fake = logits[:n], logits[n:]
            d_core = tiled_mean(self._d_fn, logits_real, logits_fake)
            d_loss = disc_factor * d_core
            log = {f"{split}/disc_loss": d_loss,
                   f"{split}/logits_real": tiled_mean(_identity_fn, logits_real),
                   f"{split}/logits_fake": tiled_mean(_identity_fn, logits_fake)}
            return d_loss, log


# ----------------------------------------------------------------------------
if __name__ == "__main__":
    key = jax.random.PRNGKey(0)
    k1, k2 = jax.random.split(key)
    # spatial 32 so the PatchGAN (3 stride-2 convs + two k=4 convs) has a valid output
    N, C, H, W = 2, 3, 32, 32
    inputs = jax.random.uniform(k1, (N, C, H, W), jnp.float32, -1.0, 1.0)
    recons = jax.random.uniform(k2, (N, C, H, W), jnp.float32, -1.0, 1.0)

    model = LPIPSWithDiscriminatorPallas(disc_start=0, seed=0)

    loss_g, log_g = model.forward(inputs, recons, optimizer_idx=0, global_step=1)
    loss_d, log_d = model.forward(inputs, recons, optimizer_idx=1, global_step=1)
    jax.block_until_ready((loss_g, loss_d))

    assert bool(jnp.isfinite(loss_g)) and bool(jnp.isfinite(loss_d))
    print("KERNEL_OK")
</pallas_src>

<mosaic_0001>
module attributes {stable_mosaic.version = 11 : i64} {
  func.func @_matmul_bias_act_kernel(%arg0: i32, %arg1: memref<256x27xbf16, #tpu.memory_space<vmem>>, %arg2: memref<27x128xbf16, #tpu.memory_space<vmem>>, %arg3: memref<1x128xf32, #tpu.memory_space<vmem>>, %arg4: memref<256x128xf32, #tpu.memory_space<vmem>>) attributes {dimension_semantics = [#tpu.dimension_semantics<parallel>], iteration_bounds = array<i64: 16>, scalar_prefetch = 0 : i64, scratch_operands = 0 : i64, tpu.core_type = #tpu.core_type<tc>, window_params = [{transform_indices = @transform_0, window_bounds = array<i64: 256, 27>}, {pipeline_mode = #tpu.pipeline_mode<synchronous>, transform_indices = @transform_1, window_bounds = array<i64: 27, 128>}, {pipeline_mode = #tpu.pipeline_mode<synchronous>, transform_indices = @transform_2, window_bounds = array<i64: 1, 128>}, {transform_indices = @transform_3, window_bounds = array<i64: 256, 128>}]} {
    %c0 = arith.constant 0 : index
    %c0_0 = arith.constant 0 : index
    %0 = vector.load %arg1[%c0, %c0_0] : memref<256x27xbf16, #tpu.memory_space<vmem>>, vector<256x27xbf16>
    %c0_1 = arith.constant 0 : index
    %c0_2 = arith.constant 0 : index
    %1 = vector.load %arg2[%c0_1, %c0_2] : memref<27x128xbf16, #tpu.memory_space<vmem>>, vector<27x128xbf16>
    %cst = arith.constant dense<0.000000e+00> : vector<256x128xf32>
    %2 = tpu.matmul %0, %1, %cst {dimension_numbers = #tpu.dot_dimension_numbers<[1], [0], [0], [1], [0, 0, 1, 1], [], []>} : vector<256x27xbf16>, vector<27x128xbf16>, vector<256x128xf32> -> vector<256x128xf32>
    %c0_3 = arith.constant 0 : index
    %c0_4 = arith.constant 0 : index
    %3 = vector.load %arg3[%c0_3, %c0_4] : memref<1x128xf32, #tpu.memory_space<vmem>>, vector<1x128xf32>
    %4 = vector.broadcast %3 : vector<1x128xf32> to vector<256x128xf32>
    %5 = arith.addf %2, %4 : vector<256x128xf32>
    %cst_5 = arith.constant 0.000000e+00 : f32
    %6 = vector.broadcast %cst_5 : f32 to vector<256x128xf32>
    %7 = arith.maximumf %5, %6 : vector<256x128xf32>
    %c0_6 = arith.constant 0 : index
    %c0_7 = arith.constant 0 : index
    %8 = vector.load %arg4[%c0_6, %c0_7] : memref<256x128xf32, #tpu.memory_space<vmem>>, vector<256x128xf32>
    tpu.vector_store %arg4[%c0_6, %c0_7], %7 {strides = array<i32>} : memref<256x128xf32, #tpu.memory_space<vmem>>, vector<256x128xf32>,
    return
  }
  func.func @transform_0(%arg0: i32) -> (i32, i32) {
    %c0_i32 = arith.constant 0 : i32
    %c0_i32_0 = arith.constant 0 : i32
    return %arg0, %c0_i32 : i32, i32
  }
  func.func @transform_1(%arg0: i32) -> (i32, i32) {
    %c0_i32 = arith.constant 0 : i32
    %c0_i32_0 = arith.constant 0 : i32
    %c0_i32_1 = arith.constant 0 : i32
    return %c0_i32, %c0_i32_0 : i32, i32
  }
  func.func @transform_2(%arg0: i32) -> (i32, i32) {
    %c0_i32 = arith.constant 0 : i32
    %c0_i32_0 = arith.constant 0 : i32
    %c0_i32_1 = arith.constant 0 : i32
    return %c0_i32, %c0_i32_0 : i32, i32
  }
  func.func @transform_3(%arg0: i32) -> (i32, i32) {
    %c0_i32 = arith.constant 0 : i32
    %c0_i32_0 = arith.constant 0 : i32
    return %arg0, %c0_i32 : i32, i32
  }
}

</mosaic_0001>

<bundles_post_ra>
// kernel: tpu_custom_call.1
= control target key start
LH: loop header
LB: loop body
LE: loop exit
PB: predicated region body
PF: predicated region fallthrough
CT: control target
= control target key end

     0   :  { %8 = vsyncpa [#allocation3], 0  ;;  %s1215_s0 = inlined_call_operand.vmem [shape: bf16[4096,27], index: 0, kind: input, shape index: {}]   ;;  %s1216_s1 = inlined_call_operand.hbm [shape: bf16[27,128], index: 1, kind: input, shape index: {}]   ;;  %s1217_s2 = inlined_call_operand.hbm [shape: f32[1,128], index: 2, kind: input, shape index: {}]   ;;  %s1218_s3 = inlined_call_operand.hbm [shape: f32[4096,128], index: 3, kind: output, shape index: {}]  }
   0x1   :  { %9 = vsyncpa [#allocation6], 0 }
   0x2   :  { %10 = vsyncpa [#allocation4], 0 }
   0x3   :  { %12 = vsyncpa [#allocation4 + $0x1], 0  ;;  %s999_s12 = smov 0   ;;  %s1001_s13 = smov 0  }
   0x4   :  { %s1003_s14 = smov 0   ;;  %s1005_s15 = smov 0  }
   0x5 LB: > { %s1020_s16 = sadd.s32 4294967295, %s970_s15   ;;  %s645_s17 = sadd.s32 4294967294, %s970_s15   ;;  %s970_s15 = sphi %s1005_s15, %s1225_s15   ;;  %s966_s14 = sphi %s1003_s14, %s1224_s14   ;;  %s962_s13 = sphi %s1001_s13, %s1223_s13   ;;  %s958_s12 = sphi %s999_s12, %s1222_s12  }
   0x6   : > { %s1024_s18 = sadd.s32 1, %s970_s15   ;;  %s93_s19 = sadd.s32 1, %s966_s14 }
   0x7   : > { %s90_s20 = ssub.s32 %s970_s15, %s1024_s18  ;;  %p103_p0 = scmp.ne.s32.totalorder %s966_s14, %s962_s13 }
   0x8   : > { %p91_p1 = scmp.eq.s32.totalorder %s90_s20, 0  ;;  %p104_p2 = scmp.eq.s32.totalorder %s1020_s16, 15 }
   0x9   : > { %p109_p3 = scmp.ne.s32.totalorder %s962_s13, %s958_s12  ;;  %p110_p4 = scmp.eq.s32.totalorder %s645_s17, 15 }
   0xa   : > { %s1035_s21 = scalar_select %p91_p1, %s966_s14, %s93_s19  }
   0xb   : > { %p1037_p5 = por %p104_p2, %p103_p0  ;;  %p1041_p6 = por %p110_p4, %p109_p3 }
   0xc   : > { %p646_p7 = scmp.ge.s32.totalorder %s970_s15, 1  ;;  %p117_p8 = scmp.lt.s32.totalorder %s970_s15, 17 }
   0xd   : > { %p795_p9 = scmp.eq.s32.totalorder %s1020_s16, 0  ;;  %s128_s27 = sshll.u32 %s1216_s1, 4  ;;  %s129_s27 = int_to_ptr.hbm [resolvable:$true] %s128_s27 }
   0xe   : > { %p1048_p10 = pnand %p646_p7, %p117_p8  ;;  %s972_s28 = smov [#allocation2]  }
   0xf   : > { %s130_s29 = sshll.u32 %s972_s28, 4  ;;  %s143_s5 = sshll.u32 %s1217_s2, 4  ;;  %s131_s29 = int_to_ptr.vmem [resolvable:$true] %s130_s29  ;;  %s144_s5 = int_to_ptr.hbm [resolvable:$true] %s143_s5 }
  0x10   : > { %p784_p11 = pneg %p1048_p10  ;;  %s973_s6 = smov 64  }
  0x11   : > { %s974_s7 = smov 4   ;;  %s975_s8 = smov [#allocation5]  }
  0x12   : > { %p785_p12 = pnand %p795_p9, %p784_p11  ;;  %s145_s9 = sshll.u32 %s975_s8, 4  ;;  %s146_s9 = int_to_ptr.vmem [resolvable:$true] %s145_s9 }
  0x13   : > { %167 = sbr.rel (%p1048_p10) target bundleno = 238 (0xee), region = 32 }
  0x14   : > { %787 = dma.hbm_to_vmem [thread:$0]  (!%p785_p12), %s129_s27, 256, %s131_s29, [#allocation3], %s973_s6, %s973_s6, %s974_s7  }
  0x15   : > { %790 = dma.hbm_to_vmem [thread:$0]  (!%p785_p12), %s144_s5, 16, %s146_s9, [#allocation6]  }
  0x18   : > { %945 = dma.done.wait (%p795_p9), [#allocation3], 256  }
  0x19   : > { %947 = vsyncadd (%p795_p9), [#allocation3], 4294967040 }
  0x1a   : > { %949 = dma.done.wait (%p795_p9), [#allocation6], 16  }
  0x1b   : > { %951 = vsyncadd (%p795_p9), [#allocation6], 4294967280  ;;  %s654_s10 = sshll.u32 %s1020_s16, 5  ;;  %vm385_vm0 = vcmask 1044480   ;;  %vm386_vm1 = vcmask 1045504   ;;  %v976_v0 = vmov 65535  }
  0x1c   : > { %p198_p13 = scmp.lt.s32.totalorder %s654_s10, 511  ;;  %v387_v1 = vsel %vm385_vm0, 4294967295, %v976_v0  ;;  %v726_v2 = vld [vmem:[#allocation2 + $0x8] sm:$0xf]  ;;  %v766_v3 = vld [vmem:[#allocation2 + $0x8] sm:$0x30] }
  0x1d   : > { %v388_v4 = vsel %vm386_vm1, %v387_v1, 0  ;;  %v727_v5 = vor.u32 %v766_v3, %v726_v2  ;;  %v765_v7 = vld [vmem:[#allocation2] sm:$0xff]  ;;  %vm336_vm2 = vcmask 220160   ;;  %s194_s24 = sand.u32 1, %s962_s13   ;;  %v1111_v24 = vld [vmem:[#allocation5] ss:$0 sm:$0xff] }
  0x1e   : > { %s1227_s10 = smov (!%p198_p13, %s654_s10), 511  ;;  %s653_s25 = sshll.u32 %s194_s24, 8 }
  0x1f   : > { %s655_s11 = sshll.u32 %s1227_s10, 2  ;;  %v390_v6 = vand.u32 %v727_v5, %v388_v4  ;;  %s1117_s26 = scalar_lea.vmem [#allocation7], %s653_s25 }
  0x20   : > { %s1076_s20 = scalar_lea.vmem %s1215_s0, %s655_s11  ;;  %s767_s27 = sshll.u32 %s1020_s16, 8 }
  0x21   : > { %398 = vmatpush.bf16.msra.mxu0 %v390_v6  ;;  %768 = vmatpush.bf16.msra.mxu1 %v390_v6  ;;  %v749_v8 = vld [vmem:[%s1076_s20] sm:$0xff]  ;;  %v750_v12 = vld [vmem:[%s1076_s20 + $0x8] sm:$0xff]  ;;  %v751_v16 = vld [vmem:[%s1076_s20 + $0x10] sm:$0xff]  ;;  %s557_s30 = scalar_lea.hbm %s1218_s3, %s767_s27  ;;  %s558_s4 = sshll.u32 %s1117_s26, 4  ;;  %s559_s4 = int_to_ptr.vmem [resolvable:$true] %s558_s4 }
  0x22   : > { %769 = vmatpush.bf16.msra.mxu2 %v390_v6  ;;  %770 = vmatpush.bf16.msra.mxu3 %v390_v6  ;;  %v753_v9 = vld [vmem:[%s1076_s20 + $0x20] sm:$0xff]  ;;  %v754_v13 = vld [vmem:[%s1076_s20 + $0x28] sm:$0xff]  ;;  %v755_v17 = vld [vmem:[%s1076_s20 + $0x30] sm:$0xff]  ;;  %s560_s16 = sshll.u32 %s557_s30, 4  ;;  %s546_s5 = scalar_lea.sflag [#allocation4], %s194_s24  ;;  %s561_s16 = int_to_ptr.hbm [resolvable:$true] %s560_s16 }
  0x23   : > { %v757_v10 = vld [vmem:[%s1076_s20 + $0x40] sm:$0xff]  ;;  %v758_v14 = vld [vmem:[%s1076_s20 + $0x48] sm:$0xff]  ;;  %v759_v18 = vld [vmem:[%s1076_s20 + $0x50] sm:$0xff]  ;;  %s914_s6 = sshra.s32 %s561_s16, 4  ;;  %s920_s10 = scalar_lea.hbm %s1218_s3, 4096  ;;  %s915_s6 = int_to_ptr.hbm [resolvable:$true] %s914_s6 }
  0x24   : > { %v761_v11 = vld [vmem:[%s1076_s20 + $0x60] sm:$0xff]  ;;  %v762_v15 = vld [vmem:[%s1076_s20 + $0x68] sm:$0xff]  ;;  %v763_v19 = vld [vmem:[%s1076_s20 + $0x70] sm:$0xff]  ;;  %s916_s7 = scalar_lea.hbm %s915_s6, 256  ;;  %p921_p3 = scmp.lt.s32.totalorder %s915_s6, %s1218_s3 }
  0x25   : > { %399 = vmatpush.bf16.msra.mxu0 %v765_v7  ;;  %771 = vmatpush.bf16.msra.mxu1 %v765_v7  ;;  %v752_v20 = vld [vmem:[%s1076_s20 + $0x18] sm:$0xff]  ;;  %p917_p0 = scmp.ne.s32.totalorder %s915_s6, %s916_s7  ;;  %p922_p4 = scmp.lt.s32.totalorder %s920_s10, %s916_s7 }
  0x26   : > { %772 = vmatpush.bf16.msra.mxu2 %v765_v7  ;;  %773 = vmatpush.bf16.msra.mxu3 %v765_v7  ;;  %v756_v21 = vld [vmem:[%s1076_s20 + $0x38] sm:$0xff] }
  0x27   : > { %v760_v22 = vld [vmem:[%s1076_s20 + $0x58] sm:$0xff]  ;;  %p918_p1 = pnand %p917_p0, %p1037_p5  ;;  %p923_p7 = por %p922_p4, %p921_p3 }
  0x28   : > { %728 = vmatmul.msk.bf16.vlgmr.msra.gmra.mxu0 %vm336_vm2, %v749_v8  ;;  %732 = vmatmul.msk.bf16.vlgmr.msra.gmra.mxu1 %vm336_vm2, %v753_v9  ;;  %v764_v23 = vld [vmem:[%s1076_s20 + $0x78] sm:$0xff] }
  0x29   : > { %736 = vmatmul.msk.bf16.vlgmr.msra.gmra.mxu2 %vm336_vm2, %v757_v10  ;;  %740 = vmatmul.msk.bf16.vlgmr.msra.gmra.mxu3 %vm336_vm2, %v761_v11  ;;  %p919_p2 = pneg %p918_p1 }
  0x2b   : > { %p924_p8 = pnand %p923_p7, %p919_p2 }
  0x38   : > { %729 = vmatmul.msk.bf16.gmra.mxu0 %vm336_vm2, %v750_v12  ;;  %733 = vmatmul.msk.bf16.gmra.mxu1 %vm336_vm2, %v754_v13 }
  0x39   : > { %737 = vmatmul.msk.bf16.gmra.mxu2 %vm336_vm2, %v758_v14  ;;  %741 = vmatmul.msk.bf16.gmra.mxu3 %vm336_vm2, %v762_v15 }
  0x48   : > { %730 = vmatmul.msk.bf16.gmra.mxu0 %vm336_vm2, %v751_v16  ;;  %734 = vmatmul.msk.bf16.gmra.mxu1 %vm336_vm2, %v755_v17 }
  0x49   : > { %738 = vmatmul.msk.bf16.gmra.mxu2 %vm336_vm2, %v759_v18  ;;  %742 = vmatmul.msk.bf16.gmra.mxu3 %vm336_vm2, %v763_v19 }
  0x58   : > { %731 = vmatmul.msk.bf16.gmra.mxu0 %vm336_vm2, %v752_v20  ;;  %735 = vmatmul.msk.bf16.gmra.mxu1 %vm336_vm2, %v756_v21 }
  0x59   : > { %739 = vmatmul.msk.bf16.gmra.mxu2 %vm336_vm2, %v760_v22  ;;  %743 = vmatmul.msk.bf16.gmra.mxu3 %vm336_vm2, %v764_v23 }
  0xa5   : > { %v401_v25 = vpop.f32.mrf.mxu0  ;;  %v421_v26 = vpop.f32.mrf.mxu1 }
  0xa6   : > { %v402_v27 = vadd.f32 %v1111_v24, %v401_v25  ;;  %v422_v28 = vadd.f32 %v1111_v24, %v421_v26 }
  0xa8   : > { %v481_v29 = vmax.f32 %v402_v27, 0.0  ;;  %v489_v30 = vmax.f32 %v422_v28, 0.0 }
  0xaa   : > { %513 = vst [vmem:[%s1117_s26] sm:$0xff] %v481_v29 }
  0xab   : > { %521 = vst [vmem:[%s1117_s26 + $0x40] sm:$0xff] %v489_v30 }
  0xac   : > { %v441_v31 = vpop.f32.mrf.mxu2  ;;  %v461_v32 = vpop.f32.mrf.mxu3 }
  0xad   : > { %v442_v33 = vadd.f32 %v1111_v24, %v441_v31  ;;  %v462_v34 = vadd.f32 %v1111_v24, %v461_v32  ;;  %v403_v35 = vpop.f32.mrf.mxu0  ;;  %v423_v36 = vpop.f32.mrf.mxu1 }
  0xae   : > { %v404_v37 = vadd.f32 %v1111_v24, %v403_v35  ;;  %v424_v38 = vadd.f32 %v1111_v24, %v423_v36 }
  0xaf   : > { %v497_v39 = vmax.f32 %v442_v33, 0.0  ;;  %v505_v40 = vmax.f32 %v462_v34, 0.0 }
  0xb0   : > { %v482_v41 = vmax.f32 %v404_v37, 0.0  ;;  %v490_v42 = vmax.f32 %v424_v38, 0.0 }
  0xb1   : > { %529 = vst [vmem:[%s1117_s26 + $0x80] sm:$0xff] %v497_v39 }
  0xb2   : > { %537 = vst [vmem:[%s1117_s26 + $0xc0] sm:$0xff] %v505_v40 }
  0xb3   : > { %514 = vst [vmem:[%s1117_s26 + $0x8] sm:$0xff] %v482_v41 }
  0xb4   : > { %522 = vst [vmem:[%s1117_s26 + $0x48] sm:$0xff] %v490_v42  ;;  %v443_v43 = vpop.f32.mrf.mxu2  ;;  %v463_v44 = vpop.f32.mrf.mxu3 }
  0xb5   : > { %v444_v45 = vadd.f32 %v1111_v24, %v443_v43  ;;  %v464_v46 = vadd.f32 %v1111_v24, %v463_v44  ;;  %v406_v47 = vpop.f32.mrf.mxu0  ;;  %v426_v48 = vpop.f32.mrf.mxu1 }
  0xb6   : > { %v407_v49 = vadd.f32 %v1111_v24, %v406_v47  ;;  %v427_v50 = vadd.f32 %v1111_v24, %v426_v48 }
  0xb7   : > { %v498_v51 = vmax.f32 %v444_v45, 0.0  ;;  %v506_v52 = vmax.f32 %v464_v46, 0.0 }
  0xb8   : > { %v483_v53 = vmax.f32 %v407_v49, 0.0  ;;  %v491_v54 = vmax.f32 %v427_v50, 0.0 }
  0xb9   : > { %530 = vst [vmem:[%s1117_s26 + $0x88] sm:$0xff] %v498_v51 }
  0xba   : > { %538 = vst [vmem:[%s1117_s26 + $0xc8] sm:$0xff] %v506_v52 }
  0xbb   : > { %515 = vst [vmem:[%s1117_s26 + $0x10] sm:$0xff] %v483_v53 }
  0xbc   : > { %523 = vst [vmem:[%s1117_s26 + $0x50] sm:$0xff] %v491_v54  ;;  %v446_v55 = vpop.f32.mrf.mxu2  ;;  %v466_v56 = vpop.f32.mrf.mxu3 }
  0xbd   : > { %v447_v57 = vadd.f32 %v1111_v24, %v446_v55  ;;  %v467_v58 = vadd.f32 %v1111_v24, %v466_v56  ;;  %v408_v59 = vpop.f32.mrf.mxu0  ;;  %v428_v60 = vpop.f32.mrf.mxu1 }
  0xbe   : > { %v409_v61 = vadd.f32 %v1111_v24, %v408_v59  ;;  %v429_v62 = vadd.f32 %v1111_v24, %v428_v60 }
  0xbf   : > { %v499_v63 = vmax.f32 %v447_v57, 0.0  ;;  %v507_v0 = vmax.f32 %v467_v58, 0.0 }
  0xc0   : > { %v484_v1 = vmax.f32 %v409_v61, 0.0  ;;  %v492_v2 = vmax.f32 %v429_v62, 0.0 }
  0xc1   : > { %531 = vst [vmem:[%s1117_s26 + $0x90] sm:$0xff] %v499_v63 }
  0xc2   : > { %539 = vst [vmem:[%s1117_s26 + $0xd0] sm:$0xff] %v507_v0 }
  0xc3   : > { %516 = vst [vmem:[%s1117_s26 + $0x18] sm:$0xff] %v484_v1 }
  0xc4   : > { %524 = vst [vmem:[%s1117_s26 + $0x58] sm:$0xff] %v492_v2  ;;  %v448_v3 = vpop.f32.mrf.mxu2  ;;  %v468_v4 = vpop.f32.mrf.mxu3 }
  0xc5   : > { %v449_v5 = vadd.f32 %v1111_v24, %v448_v3  ;;  %v469_v6 = vadd.f32 %v1111_v24, %v468_v4  ;;  %v411_v7 = vpop.f32.mrf.mxu0  ;;  %v431_v8 = vpop.f32.mrf.mxu1 }
  0xc6   : > { %v412_v9 = vadd.f32 %v1111_v24, %v411_v7  ;;  %v432_v10 = vadd.f32 %v1111_v24, %v431_v8 }
  0xc7   : > { %v500_v11 = vmax.f32 %v449_v5, 0.0  ;;  %v508_v12 = vmax.f32 %v469_v6, 0.0 }
  0xc8   : > { %v485_v13 = vmax.f32 %v412_v9, 0.0  ;;  %v493_v14 = vmax.f32 %v432_v10, 0.0 }
  0xc9   : > { %532 = vst [vmem:[%s1117_s26 + $0x98] sm:$0xff] %v500_v11 }
  0xca   : > { %540 = vst [vmem:[%s1117_s26 + $0xd8] sm:$0xff] %v508_v12 }
  0xcb   : > { %517 = vst [vmem:[%s1117_s26 + $0x20] sm:$0xff] %v485_v13 }
  0xcc   : > { %525 = vst [vmem:[%s1117_s26 + $0x60] sm:$0xff] %v493_v14  ;;  %v451_v15 = vpop.f32.mrf.mxu2  ;;  %v471_v16 = vpop.f32.mrf.mxu3 }
  0xcd   : > { %v452_v17 = vadd.f32 %v1111_v24, %v451_v15  ;;  %v472_v18 = vadd.f32 %v1111_v24, %v471_v16  ;;  %v413_v19 = vpop.f32.mrf.mxu0  ;;  %v433_v20 = vpop.f32.mrf.mxu1 }
  0xce   : > { %v414_v21 = vadd.f32 %v1111_v24, %v413_v19  ;;  %v434_v22 = vadd.f32 %v1111_v24, %v433_v20 }
  0xcf   : > { %v501_v23 = vmax.f32 %v452_v17, 0.0  ;;  %v509_v25 = vmax.f32 %v472_v18, 0.0 }
  0xd0   : > { %v486_v26 = vmax.f32 %v414_v21, 0.0  ;;  %v494_v27 = vmax.f32 %v434_v22, 0.0 }
  0xd1   : > { %533 = vst [vmem:[%s1117_s26 + $0xa0] sm:$0xff] %v501_v23 }
  0xd2   : > { %541 = vst [vmem:[%s1117_s26 + $0xe0] sm:$0xff] %v509_v25 }
  0xd3   : > { %518 = vst [vmem:[%s1117_s26 + $0x28] sm:$0xff] %v486_v26 }
  0xd4   : > { %526 = vst [vmem:[%s1117_s26 + $0x68] sm:$0xff] %v494_v27  ;;  %v453_v28 = vpop.f32.mrf.mxu2  ;;  %v473_v29 = vpop.f32.mrf.mxu3 }
  0xd5   : > { %v454_v30 = vadd.f32 %v1111_v24, %v453_v28  ;;  %v474_v31 = vadd.f32 %v1111_v24, %v473_v29  ;;  %v416_v32 = vpop.f32.mrf.mxu0  ;;  %v436_v33 = vpop.f32.mrf.mxu1 }
  0xd6   : > { %v417_v34 = vadd.f32 %v1111_v24, %v416_v32  ;;  %v437_v35 = vadd.f32 %v1111_v24, %v436_v33 }
  0xd7   : > { %v502_v36 = vmax.f32 %v454_v30, 0.0  ;;  %v510_v37 = vmax.f32 %v474_v31, 0.0 }
  0xd8   : > { %v487_v38 = vmax.f32 %v417_v34, 0.0  ;;  %v495_v39 = vmax.f32 %v437_v35, 0.0 }
  0xd9   : > { %534 = vst [vmem:[%s1117_s26 + $0xa8] sm:$0xff] %v502_v36 }
  0xda   : > { %542 = vst [vmem:[%s1117_s26 + $0xe8] sm:$0xff] %v510_v37 }
  0xdb   : > { %519 = vst [vmem:[%s1117_s26 + $0x30] sm:$0xff] %v487_v38 }
  0xdc   : > { %527 = vst [vmem:[%s1117_s26 + $0x70] sm:$0xff] %v495_v39  ;;  %v456_v40 = vpop.f32.mrf.mxu2  ;;  %v476_v41 = vpop.f32.mrf.mxu3 }
  0xdd   : > { %v457_v42 = vadd.f32 %v1111_v24, %v456_v40  ;;  %v477_v43 = vadd.f32 %v1111_v24, %v476_v41  ;;  %v418_v44 = vpop.f32.mrf.mxu0  ;;  %v438_v45 = vpop.f32.mrf.mxu1 }
  0xde   : > { %v419_v46 = vadd.f32 %v1111_v24, %v418_v44  ;;  %v439_v47 = vadd.f32 %v1111_v24, %v438_v45 }
  0xdf   : > { %v503_v48 = vmax.f32 %v457_v42, 0.0  ;;  %v511_v49 = vmax.f32 %v477_v43, 0.0 }
  0xe0   : > { %v488_v50 = vmax.f32 %v419_v46, 0.0  ;;  %v496_v51 = vmax.f32 %v439_v47, 0.0 }
  0xe1   : > { %535 = vst [vmem:[%s1117_s26 + $0xb0] sm:$0xff] %v503_v48 }
  0xe2   : > { %543 = vst [vmem:[%s1117_s26 + $0xf0] sm:$0xff] %v511_v49 }
  0xe3   : > { %520 = vst [vmem:[%s1117_s26 + $0x38] sm:$0xff] %v488_v50 }
  0xe4   : > { %528 = vst [vmem:[%s1117_s26 + $0x78] sm:$0xff] %v496_v51  ;;  %v458_v52 = vpop.f32.mrf.mxu2  ;;  %v478_v53 = vpop.f32.mrf.mxu3 }
  0xe5   : > { %v459_v54 = vadd.f32 %v1111_v24, %v458_v52  ;;  %v479_v55 = vadd.f32 %v1111_v24, %v478_v53 }
  0xe7   : > { %v504_v56 = vmax.f32 %v459_v54, 0.0  ;;  %v512_v57 = vmax.f32 %v479_v55, 0.0 }
  0xe9   : > { %536 = vst [vmem:[%s1117_s26 + $0xb8] sm:$0xff] %v504_v56 }
  0xea   : > { %544 = vst [vmem:[%s1117_s26 + $0xf8] sm:$0xff] %v512_v57 }
  0xeb   : > { %927 = shalt.err (!%p924_p8)
}
  0xec   : > { %s977_s19 = smov 128   ;;  %s978_s20 = smov 8  }
  0xed   : > { %782 = dma.vmem_to_hbm [thread:$0]  (%p1037_p5), %s559_s4, 4096, %s561_s16, %s546_s5, %s977_s19, %s977_s19, %s978_s20  }
  0xee PF: > { %p799_p9 = scmp.ge.s32.totalorder %s970_s15, 2  ;;  %s575_s24 = sand.u32 1, %s958_s12  }
  0xef   : > { %s576_s25 = scalar_lea.sflag [#allocation4], %s575_s24 }
  0xf0   : > { %p792_p10 = pnand %p799_p9, %p1041_p6 }
  0xf2   : > { %p793_p11 = pneg %p792_p10 }
  0xf4   : > { %953 = dma.done.wait (%p793_p11), %s576_s25, 4096  }
  0xf5   : > { %955 = vsyncadd (%p793_p11), %s576_s25, 4294963200  ;;  %p15_p12 = scmp.ge.s32.totalorder %s1024_s18, 18   ;;  %s1222_s12 = smov %s962_s13 }
  0xf6   : > { %s1223_s13 = smov %s966_s14  ;;  %s1224_s14 = smov %s1035_s21 }
  0xf7   : > { %s1225_s15 = smov %s1024_s18  ;;  %17 = sbr.rel (!%p15_p12) target bundleno = 5 (0x5), region = 76 }
  0xfc   :  { %582 = vsyncpa [#allocation3], 1 }
  0xfd   :  { %584 = vsyncpa [#allocation3 + $0x1], 1 }
  0xfe   :  { %585 = vsyncpa [#allocation6], 1 }
  0xff   :  { %586 = vsyncpa [#allocation4], 1 }
 0x100   :  { %588 = vsyncpa [#allocation4 + $0x1], 1 }

</bundles_post_ra>
